<compile_context>
chip_gen: v6e
topology: v6e:2x2x1
jax: 0.10.0
libtpu: 0.0.40
codegen_flags: <defaults>
</compile_context>

<pallas_src>
import math
import functools

import jax
import jax.numpy as jnp
from jax import lax
from jax.experimental import pallas as pl
from jax.experimental.pallas import tpu as pltpu


def residual_block_kernel(x_pad_ref, cond_ref, dstep_ref,
                          w_prev_ref, w_cur_ref, w_next_ref, w_cond_ref,
                          b_main_ref,
                          w_out_ref, w_xid_ref, b_out_ref,
                          out_ref, *, dilation, tile_t, seq_len, channels):
  f32 = jnp.float32
  d = dilation
  C = channels
  j = pl.program_id(1)
  t0 = pl.multiple_of(j * tile_t, tile_t)

  # Extended (halo) window of the zero-padded input: padded rows [t0, t0+TT+2d).
  x_ext = x_pad_ref[0, pl.ds(t0, tile_t + 2 * d), :]            # (TT+2d, C) bf16

  # dstep only on valid (non-padding) rows -> conv zero-padding stays exact.
  p_idx = t0 + lax.broadcasted_iota(jnp.int32, (tile_t + 2 * d, 1), 0)
  valid = jnp.logical_and(p_idx >= d, p_idx < seq_len + d)       # (TT+2d, 1)
  dstep = dstep_ref[0]                                           # (1, C) bf16
  y_ext = jnp.where(valid, x_ext + dstep, 0)                     # (TT+2d, C) bf16

  # Dilated-conv taps as static slices of the extended window.
  y_prev = y_ext[:tile_t]                                        # y[t-d]
  y_cur = y_ext[d:d + tile_t]                                    # y[t]
  y_next = y_ext[2 * d:2 * d + tile_t]                           # y[t+d]
  x_cur = x_ext[d:d + tile_t]                                    # raw x for residual path

  cond = cond_ref[0]                                             # (TT, E) bf16

  # 4 accumulating MXU dots (f32 accumulator) replace the concat + one big dot.
  pre = jnp.dot(y_prev, w_prev_ref[...], preferred_element_type=f32)
  pre += jnp.dot(y_cur, w_cur_ref[...], preferred_element_type=f32)
  pre += jnp.dot(y_next, w_next_ref[...], preferred_element_type=f32)
  pre += jnp.dot(cond, w_cond_ref[...], preferred_element_type=f32)
  pre += b_main_ref[...]                                         # (TT, 2C) f32

  # Gated activation in f32 (v5e-safe). At production C>=128 the split offset is
  # a 128-lane multiple; at the demo C it is a small one-off lane slice.
  act = jax.nn.sigmoid(pre[:, :C]) * jnp.tanh(pre[:, C:])
  act = act.astype(w_out_ref.dtype)

  # Output projection, residual add (identity block) and 1/sqrt(2) scale are all
  # folded into the packed weights -> one lane-dense (TT, NOUT) store.
  out = jnp.dot(act, w_out_ref[...], preferred_element_type=f32)
  out += jnp.dot(x_cur, w_xid_ref[...], preferred_element_type=f32)
  out += b_out_ref[...]
  out_ref[0] = out.astype(out_ref.dtype)


def residual_block_pallas(x_nct, cond_net, diff_bc, params, dilation, tile_t=None):
  """x_nct: (B, C, T), cond_net: (B, E, T), diff_bc: (B, C). Returns NCT (res, skip)."""
  B, C, T = x_nct.shape
  E = cond_net.shape[1]
  d = int(dilation)
  assert d >= 1

  if tile_t is None:
    tile_t = T if T % 8 else min(T, 512)
  assert T % tile_t == 0, "tile_t must divide T"
  assert tile_t % 8 == 0 or tile_t == T, "tile_t must be a multiple of 8 (or == T)"
  nT = T // tile_t

  W_dil, b_dil = params["W_dil"], params["b_dil"]      # (2C, C, 3), (2C,)
  W_diff, b_diff = params["W_diff"], params["b_diff"]  # (C, C), (C,)
  W_cond, b_cond = params["W_cond"], params["b_cond"]  # (2C, E, 1), (2C,)
  W_out, b_out = params["W_out"], params["b_out"]      # (2C, C, 1), (2C,)

  inv_sqrt2 = 1.0 / math.sqrt(2.0)
  bf16 = jnp.bfloat16
  f32 = jnp.float32

  # ---- activations: channels-last, bf16, x zero-padded along time ------------
  x_ntc = jnp.transpose(x_nct, (0, 2, 1))                          # (B, T, C)
  x_pad = jnp.pad(x_ntc, ((0, 0), (d, d), (0, 0))).astype(bf16)    # (B, T+2d, C)
  cond_ntc = jnp.transpose(cond_net, (0, 2, 1)).astype(bf16)       # (B, T, E)

  # Tiny diffusion Linear stays batched in XLA; passed as (B, 1, C).
  dstep = (diff_bc @ W_diff.T + b_diff).reshape(B, 1, C).astype(bf16)

  # ---- weight packing (bf16 MXU operands, f32 biases) ------------------------
  w_prev = W_dil[:, :, 0].T.astype(bf16)                           # (C, 2C) pairs with y[t-d]
  w_cur = W_dil[:, :, 1].T.astype(bf16)                            # (C, 2C) pairs with y[t]
  w_next = W_dil[:, :, 2].T.astype(bf16)                           # (C, 2C) pairs with y[t+d]
  w_cnd = W_cond[:, :, 0].T.astype(bf16)                           # (E, 2C)
  b_main = (b_dil + b_cond).reshape(1, 2 * C).astype(f32)

  NOUT = max(128, int(pl.cdiv(2 * C, 128)) * 128)                  # lane-dense output width
  w_out_core = W_out[:, :, 0].T                                    # (C, 2C): [res | skip]
  w_out_scaled = jnp.concatenate(
      [w_out_core[:, :C] * inv_sqrt2, w_out_core[:, C:]], axis=1)
  w_out_pad = jnp.zeros((C, NOUT), f32).at[:, :2 * C].set(w_out_scaled).astype(bf16)
  w_xid = jnp.zeros((C, NOUT), f32).at[:, :C].set(inv_sqrt2 * jnp.eye(C, dtype=f32)).astype(bf16)
  b_out_scaled = jnp.concatenate([b_out[:C] * inv_sqrt2, b_out[C:]])
  b_out_pad = jnp.zeros((1, NOUT), f32).at[0, :2 * C].set(b_out_scaled)

  T_pad = T + 2 * d

  def const_spec(shape):
    return pl.BlockSpec(shape, lambda b, j: (0, 0))

  out = pl.pallas_call(
      functools.partial(residual_block_kernel, dilation=d, tile_t=tile_t,
                        seq_len=T, channels=C),
      out_shape=jax.ShapeDtypeStruct((B, T, NOUT), f32),
      grid=(B, nT),
      in_specs=[
          pl.BlockSpec((1, T_pad, C), lambda b, j: (b, 0, 0)),   # x_pad, resident per batch
          pl.BlockSpec((1, tile_t, E), lambda b, j: (b, j, 0)),  # conditioner tile
          pl.BlockSpec((1, 1, C), lambda b, j: (b, 0, 0)),       # dstep (tiny, per batch)
          const_spec((C, 2 * C)),                                # w_prev
          const_spec((C, 2 * C)),                                # w_cur
          const_spec((C, 2 * C)),                                # w_next
          const_spec((E, 2 * C)),                                # w_cond
          const_spec((1, 2 * C)),                                # b_main (b_dil + b_cond)
          const_spec((C, NOUT)),                                 # w_out (scaled, lane-padded)
          const_spec((C, NOUT)),                                 # w_xid (residual identity)
          const_spec((1, NOUT)),                                 # b_out (scaled, lane-padded)
      ],
      out_specs=pl.BlockSpec((1, tile_t, NOUT), lambda b, j: (b, j, 0)),
      compiler_params=pltpu.CompilerParams(
          dimension_semantics=("parallel", "parallel"),
          vmem_limit_bytes=48 * 1024 * 1024),
  )(x_pad, cond_ntc, dstep, w_prev, w_cur, w_next, w_cnd, b_main,
    w_out_pad, w_xid, b_out_pad)

  res = jnp.transpose(out[:, :, :C], (0, 2, 1))                    # back to NCT
  skip = jnp.transpose(out[:, :, C:2 * C], (0, 2, 1))
  return res, skip


def residual_block_reference(x, cond, diff, params, dilation):
  """Pure-JAX reference matching the PyTorch module (NCT layout)."""
  B, C, T = x.shape
  dn = ("NCH", "OIH", "NCH")

  dstep = diff @ params["W_diff"].T + params["b_diff"]             # (B, C)
  dstep = dstep[:, :, None]                                        # (B, C, 1)

  cond_p = lax.conv_general_dilated(
      cond, params["W_cond"], window_strides=(1,), padding=[(0, 0)],
      dimension_numbers=dn) + params["b_cond"][None, :, None]

  y = x + dstep
  y = lax.conv_general_dilated(
      y, params["W_dil"], window_strides=(1,), padding=[(dilation, dilation)],
      rhs_dilation=(dilation,), dimension_numbers=dn)
  y = y + params["b_dil"][None, :, None] + cond_p

  gate, filt = y[:, :C, :], y[:, C:, :]
  y = jax.nn.sigmoid(gate) * jnp.tanh(filt)

  y = lax.conv_general_dilated(
      y, params["W_out"], window_strides=(1,), padding=[(0, 0)],
      dimension_numbers=dn) + params["b_out"][None, :, None]
  residual, skip = y[:, :C, :], y[:, C:, :]
  return (x + residual) / math.sqrt(2.0), skip


def make_params(key, encoder_hidden, residual_channels):
  C, E = residual_channels, encoder_hidden
  ks = jax.random.split(key, 8)
  s = 0.1
  return {
      "W_dil":  s * jax.random.normal(ks[0], (2 * C, C, 3), jnp.float32),
      "b_dil":  s * jax.random.normal(ks[1], (2 * C,), jnp.float32),
      "W_diff": s * jax.random.normal(ks[2], (C, C), jnp.float32),
      "b_diff": s * jax.random.normal(ks[3], (C,), jnp.float32),
      "W_cond": s * jax.random.normal(ks[4], (2 * C, E, 1), jnp.float32),
      "b_cond": s * jax.random.normal(ks[5], (2 * C,), jnp.float32),
      "W_out":  s * jax.random.normal(ks[6], (2 * C, C, 1), jnp.float32),
      "b_out":  s * jax.random.normal(ks[7], (2 * C,), jnp.float32),
  }


if __name__ == "__main__":
  B = 2
  residual_channels = 32
  encoder_hidden = 64
  T = 24
  dilation = 2
  tile_t = 8           # 3 time tiles per batch -> 6 pipelined grid steps

  key = jax.random.PRNGKey(0)
  k_x, k_c, k_d, k_p = jax.random.split(key, 4)
  x = jax.random.normal(k_x, (B, residual_channels, T), jnp.float32)
  conditioner = jax.random.normal(k_c, (B, encoder_hidden, T), jnp.float32)
  diffusion_step = jax.random.normal(k_d, (B, residual_channels), jnp.float32)
  params = make_params(k_p, encoder_hidden, residual_channels)

  out_res, out_skip = residual_block_pallas(
      x, conditioner, diffusion_step, params, dilation, tile_t=tile_t)
  out_res = jax.block_until_ready(out_res)
  out_skip = jax.block_until_ready(out_skip)

  ref_res, ref_skip = residual_block_reference(
      x, conditioner, diffusion_step, params, dilation)

  # bf16 MXU operands with f32 accumulation -> slightly looser tolerance.
  assert jnp.allclose(out_res, ref_res, atol=5e-2, rtol=5e-2), "residual mismatch"
  assert jnp.allclose(out_skip, ref_skip, atol=5e-2, rtol=5e-2), "skip mismatch"

  print("KERNEL_OK")
</pallas_src>

<mosaic_0001>
module attributes {stable_mosaic.version = 11 : i64} {
  func.func @residual_block_kernel(%arg0: i32, %arg1: i32, %arg2: memref<1x28x32xbf16, #tpu.memory_space<vmem>>, %arg3: memref<1x8x64xbf16, #tpu.memory_space<vmem>>, %arg4: memref<1x1x32xbf16, #tpu.memory_space<vmem>>, %arg5: memref<32x64xbf16, #tpu.memory_space<vmem>>, %arg6: memref<32x64xbf16, #tpu.memory_space<vmem>>, %arg7: memref<32x64xbf16, #tpu.memory_space<vmem>>, %arg8: memref<64x64xbf16, #tpu.memory_space<vmem>>, %arg9: memref<1x64xf32, #tpu.memory_space<vmem>>, %arg10: memref<32x128xbf16, #tpu.memory_space<vmem>>, %arg11: memref<32x128xbf16, #tpu.memory_space<vmem>>, %arg12: memref<1x128xf32, #tpu.memory_space<vmem>>, %arg13: memref<1x8x128xf32, #tpu.memory_space<vmem>>) attributes {dimension_semantics = [#tpu.dimension_semantics<parallel>, #tpu.dimension_semantics<parallel>], iteration_bounds = array<i64: 2, 3>, scalar_prefetch = 0 : i64, scratch_operands = 0 : i64, tpu.core_type = #tpu.core_type<tc>, window_params = [{transform_indices = @transform_0, window_bounds = array<i64: 1, 28, 32>}, {transform_indices = @transform_1, window_bounds = array<i64: 1, 8, 64>}, {transform_indices = @transform_2, window_bounds = array<i64: 1, 1, 32>}, {pipeline_mode = #tpu.pipeline_mode<synchronous>, transform_indices = @transform_3, window_bounds = array<i64: 32, 64>}, {pipeline_mode = #tpu.pipeline_mode<synchronous>, transform_indices = @transform_4, window_bounds = array<i64: 32, 64>}, {pipeline_mode = #tpu.pipeline_mode<synchronous>, transform_indices = @transform_5, window_bounds = array<i64: 32, 64>}, {pipeline_mode = #tpu.pipeline_mode<synchronous>, transform_indices = @transform_6, window_bounds = array<i64: 64, 64>}, {pipeline_mode = #tpu.pipeline_mode<synchronous>, transform_indices = @transform_7, window_bounds = array<i64: 1, 64>}, {pipeline_mode = #tpu.pipeline_mode<synchronous>, transform_indices = @transform_8, window_bounds = array<i64: 32, 128>}, {pipeline_mode = #tpu.pipeline_mode<synchronous>, transform_indices = @transform_9, window_bounds = array<i64: 32, 128>}, {pipeline_mode = #tpu.pipeline_mode<synchronous>, transform_indices = @transform_10, window_bounds = array<i64: 1, 128>}, {transform_indices = @transform_11, window_bounds = array<i64: 1, 8, 128>}]} {
    %c8_i32 = arith.constant 8 : i32
    %0 = arith.muli %arg1, %c8_i32 : i32
    %1 = tpu.assume_multiple %0, 8 : i32
    %c0 = arith.constant 0 : index
    %2 = arith.index_cast %1 : i32 to index
    %c0_0 = arith.constant 0 : index
    %3 = vector.load %arg2[%c0, %2, %c0_0] : memref<1x28x32xbf16, #tpu.memory_space<vmem>>, vector<1x12x32xbf16>
    %4 = vector.shape_cast %3 : vector<1x12x32xbf16> to vector<12x32xbf16>
    %5 = tpu.iota {dimensions = array<i32: 0>} : vector<12x1xi32>
    %6 = vector.broadcast %1 : i32 to vector<12x1xi32>
    %7 = arith.addi %6, %5 : vector<12x1xi32>
    %c2_i32 = arith.constant 2 : i32
    %8 = vector.broadcast %c2_i32 : i32 to vector<12x1xi32>
    %9 = arith.cmpi sge, %7, %8 : vector<12x1xi32>
    %c26_i32 = arith.constant 26 : i32
    %10 = vector.broadcast %c26_i32 : i32 to vector<12x1xi32>
    %11 = arith.cmpi slt, %7, %10 : vector<12x1xi32>
    %12 = arith.andi %9, %11 : vector<12x1xi1>
    %c0_1 = arith.constant 0 : index
    %c0_2 = arith.constant 0 : index
    %c0_3 = arith.constant 0 : index
    %13 = vector.load %arg4[%c0_1, %c0_2, %c0_3] : memref<1x1x32xbf16, #tpu.memory_space<vmem>>, vector<1x1x32xbf16>
    %14 = vector.shape_cast %13 : vector<1x1x32xbf16> to vector<1x32xbf16>
    %15 = vector.broadcast %14 : vector<1x32xbf16> to vector<12x32xbf16>
    %16 = arith.addf %4, %15 : vector<12x32xbf16>
    %c0_i32 = arith.constant 0 : i32
    %17 = arith.sitofp %c0_i32 : i32 to bf16
    %18 = vector.shape_cast %12 : vector<12x1xi1> to vector<12x1xi1>
    %19 = vector.broadcast %18 : vector<12x1xi1> to vector<12x32xi1>
    %20 = vector.broadcast %17 : bf16 to vector<12x32xbf16>
    %21 = arith.select %19, %16, %20 : vector<12x32xi1>, vector<12x32xbf16>
    %22 = vector.extract_strided_slice %21 {offsets = [0, 0], sizes = [8, 32], strides = [1, 1]} : vector<12x32xbf16> to vector<8x32xbf16>
    %23 = vector.extract_strided_slice %21 {offsets = [2, 0], sizes = [8, 32], strides = [1, 1]} : vector<12x32xbf16> to vector<8x32xbf16>
    %24 = vector.extract_strided_slice %21 {offsets = [4, 0], sizes = [8, 32], strides = [1, 1]} : vector<12x32xbf16> to vector<8x32xbf16>
    %25 = vector.extract_strided_slice %4 {offsets = [2, 0], sizes = [8, 32], strides = [1, 1]} : vector<12x32xbf16> to vector<8x32xbf16>
    %c0_4 = arith.constant 0 : index
    %c0_5 = arith.constant 0 : index
    %c0_6 = arith.constant 0 : index
    %26 = vector.load %arg3[%c0_4, %c0_5, %c0_6] : memref<1x8x64xbf16, #tpu.memory_space<vmem>>, vector<1x8x64xbf16>
    %27 = vector.shape_cast %26 : vector<1x8x64xbf16> to vector<8x64xbf16>
    %c0_7 = arith.constant 0 : index
    %c0_8 = arith.constant 0 : index
    %28 = vector.load %arg5[%c0_7, %c0_8] : memref<32x64xbf16, #tpu.memory_space<vmem>>, vector<32x64xbf16>
    %cst = arith.constant dense<0.000000e+00> : vector<8x64xf32>
    %29 = tpu.matmul %22, %28, %cst {dimension_numbers = #tpu.dot_dimension_numbers<[1], [0], [0], [1], [0, 0, 1, 1], [], []>} : vector<8x32xbf16>, vector<32x64xbf16>, vector<8x64xf32> -> vector<8x64xf32>
    %c0_9 = arith.constant 0 : index
    %c0_10 = arith.constant 0 : index
    %30 = vector.load %arg6[%c0_9, %c0_10] : memref<32x64xbf16, #tpu.memory_space<vmem>>, vector<32x64xbf16>
    %cst_11 = arith.constant dense<0.000000e+00> : vector<8x64xf32>
    %31 = tpu.matmul %23, %30, %cst_11 {dimension_numbers = #tpu.dot_dimension_numbers<[1], [0], [0], [1], [0, 0, 1, 1], [], []>} : vector<8x32xbf16>, vector<32x64xbf16>, vector<8x64xf32> -> vector<8x64xf32>
    %32 = arith.addf %29, %31 : vector<8x64xf32>
    %c0_12 = arith.constant 0 : index
    %c0_13 = arith.constant 0 : index
    %33 = vector.load %arg7[%c0_12, %c0_13] : memref<32x64xbf16, #tpu.memory_space<vmem>>, vector<32x64xbf16>
    %cst_14 = arith.constant dense<0.000000e+00> : vector<8x64xf32>
    %34 = tpu.matmul %24, %33, %cst_14 {dimension_numbers = #tpu.dot_dimension_numbers<[1], [0], [0], [1], [0, 0, 1, 1], [], []>} : vector<8x32xbf16>, vector<32x64xbf16>, vector<8x64xf32> -> vector<8x64xf32>
    %35 = arith.addf %32, %34 : vector<8x64xf32>
    %c0_15 = arith.constant 0 : index
    %c0_16 = arith.constant 0 : index
    %36 = vector.load %arg8[%c0_15, %c0_16] : memref<64x64xbf16, #tpu.memory_space<vmem>>, vector<64x64xbf16>
    %cst_17 = arith.constant dense<0.000000e+00> : vector<8x64xf32>
    %37 = tpu.matmul %27, %36, %cst_17 {dimension_numbers = #tpu.dot_dimension_numbers<[1], [0], [0], [1], [0, 0, 1, 1], [], []>} : vector<8x64xbf16>, vector<64x64xbf16>, vector<8x64xf32> -> vector<8x64xf32>
    %38 = arith.addf %35, %37 : vector<8x64xf32>
    %c0_18 = arith.constant 0 : index
    %c0_19 = arith.constant 0 : index
    %39 = vector.load %arg9[%c0_18, %c0_19] : memref<1x64xf32, #tpu.memory_space<vmem>>, vector<1x64xf32>
    %40 = vector.broadcast %39 : vector<1x64xf32> to vector<8x64xf32>
    %41 = arith.addf %38, %40 : vector<8x64xf32>
    %42 = vector.extract_strided_slice %41 {offsets = [0, 0], sizes = [8, 32], strides = [1, 1]} : vector<8x64xf32> to vector<8x32xf32>
    %43 = arith.negf %42 : vector<8x32xf32>
    %44 = math.exp %43 : vector<8x32xf32>
    %cst_20 = arith.constant 1.000000e+00 : f32
    %45 = vector.broadcast %cst_20 : f32 to vector<8x32xf32>
    %46 = arith.addf %45, %44 : vector<8x32xf32>
    %47 = arith.divf %45, %46 : vector<8x32xf32>
    %48 = vector.extract_strided_slice %41 {offsets = [0, 32], sizes = [8, 32], strides = [1, 1]} : vector<8x64xf32> to vector<8x32xf32>
    %49 = math.tanh %48 : vector<8x32xf32>
    %50 = arith.mulf %47, %49 : vector<8x32xf32>
    %51 = arith.truncf %50 : vector<8x32xf32> to vector<8x32xbf16>
    %c0_21 = arith.constant 0 : index
    %c0_22 = arith.constant 0 : index
    %52 = vector.load %arg10[%c0_21, %c0_22] : memref<32x128xbf16, #tpu.memory_space<vmem>>, vector<32x128xbf16>
    %cst_23 = arith.constant dense<0.000000e+00> : vector<8x128xf32>
    %53 = tpu.matmul %51, %52, %cst_23 {dimension_numbers = #tpu.dot_dimension_numbers<[1], [0], [0], [1], [0, 0, 1, 1], [], []>} : vector<8x32xbf16>, vector<32x128xbf16>, vector<8x128xf32> -> vector<8x128xf32>
    %c0_24 = arith.constant 0 : index
    %c0_25 = arith.constant 0 : index
    %54 = vector.load %arg11[%c0_24, %c0_25] : memref<32x128xbf16, #tpu.memory_space<vmem>>, vector<32x128xbf16>
    %cst_26 = arith.constant dense<0.000000e+00> : vector<8x128xf32>
    %55 = tpu.matmul %25, %54, %cst_26 {dimension_numbers = #tpu.dot_dimension_numbers<[1], [0], [0], [1], [0, 0, 1, 1], [], []>} : vector<8x32xbf16>, vector<32x128xbf16>, vector<8x128xf32> -> vector<8x128xf32>
    %56 = arith.addf %53, %55 : vector<8x128xf32>
    %c0_27 = arith.constant 0 : index
    %c0_28 = arith.constant 0 : index
    %57 = vector.load %arg12[%c0_27, %c0_28] : memref<1x128xf32, #tpu.memory_space<vmem>>, vector<1x128xf32>
    %58 = vector.broadcast %57 : vector<1x128xf32> to vector<8x128xf32>
    %59 = arith.addf %56, %58 : vector<8x128xf32>
    %c0_29 = arith.constant 0 : index
    %c0_30 = arith.constant 0 : index
    %c0_31 = arith.constant 0 : index
    %60 = vector.load %arg13[%c0_29, %c0_30, %c0_31] : memref<1x8x128xf32, #tpu.memory_space<vmem>>, vector<1x8x128xf32>
    %61 = vector.shape_cast %60 : vector<1x8x128xf32> to vector<8x128xf32>
    %62 = vector.shape_cast %59 : vector<8x128xf32> to vector<1x8x128xf32>
    tpu.vector_store %arg13[%c0_29, %c0_30, %c0_31], %62 {strides = array<i32>} : memref<1x8x128xf32, #tpu.memory_space<vmem>>, vector<1x8x128xf32>,
    return
  }
  func.func @transform_0(%arg0: i32, %arg1: i32) -> (i32, i32, i32) {
    %c0_i32 = arith.constant 0 : i32
    %c0_i32_0 = arith.constant 0 : i32
    %c0_i32_1 = arith.constant 0 : i32
    return %arg0, %c0_i32, %c0_i32_0 : i32, i32, i32
  }
  func.func @transform_1(%arg0: i32, %arg1: i32) -> (i32, i32, i32) {
    %c0_i32 = arith.constant 0 : i32
    %c0_i32_0 = arith.constant 0 : i32
    return %arg0, %arg1, %c0_i32 : i32, i32, i32
  }
  func.func @transform_2(%arg0: i32, %arg1: i32) -> (i32, i32, i32) {
    %c0_i32 = arith.constant 0 : i32
    %c0_i32_0 = arith.constant 0 : i32
    %c0_i32_1 = arith.constant 0 : i32
    return %arg0, %c0_i32, %c0_i32_0 : i32, i32, i32
  }
  func.func @transform_3(%arg0: i32, %arg1: i32) -> (i32, i32) {
    %c0_i32 = arith.constant 0 : i32
    %c0_i32_0 = arith.constant 0 : i32
    %c0_i32_1 = arith.constant 0 : i32
    return %c0_i32, %c0_i32_0 : i32, i32
  }
  func.func @transform_4(%arg0: i32, %arg1: i32) -> (i32, i32) {
    %c0_i32 = arith.constant 0 : i32
    %c0_i32_0 = arith.constant 0 : i32
    %c0_i32_1 = arith.constant 0 : i32
    return %c0_i32, %c0_i32_0 : i32, i32
  }
  func.func @transform_5(%arg0: i32, %arg1: i32) -> (i32, i32) {
    %c0_i32 = arith.constant 0 : i32
    %c0_i32_0 = arith.constant 0 : i32
    %c0_i32_1 = arith.constant 0 : i32
    return %c0_i32, %c0_i32_0 : i32, i32
  }
  func.func @transform_6(%arg0: i32, %arg1: i32) -> (i32, i32) {
    %c0_i32 = arith.constant 0 : i32
    %c0_i32_0 = arith.constant 0 : i32
    %c0_i32_1 = arith.constant 0 : i32
    return %c0_i32, %c0_i32_0 : i32, i32
  }
  func.func @transform_7(%arg0: i32, %arg1: i32) -> (i32, i32) {
    %c0_i32 = arith.constant 0 : i32
    %c0_i32_0 = arith.constant 0 : i32
    %c0_i32_1 = arith.constant 0 : i32
    return %c0_i32, %c0_i32_0 : i32, i32
  }
  func.func @transform_8(%arg0: i32, %arg1: i32) -> (i32, i32) {
    %c0_i32 = arith.constant 0 : i32
    %c0_i32_0 = arith.constant 0 : i32
    %c0_i32_1 = arith.constant 0 : i32
    return %c0_i32, %c0_i32_0 : i32, i32
  }
  func.func @transform_9(%arg0: i32, %arg1: i32) -> (i32, i32) {
    %c0_i32 = arith.constant 0 : i32
    %c0_i32_0 = arith.constant 0 : i32
    %c0_i32_1 = arith.constant 0 : i32
    return %c0_i32, %c0_i32_0 : i32, i32
  }
  func.func @transform_10(%arg0: i32, %arg1: i32) -> (i32, i32) {
    %c0_i32 = arith.constant 0 : i32
    %c0_i32_0 = arith.constant 0 : i32
    %c0_i32_1 = arith.constant 0 : i32
    return %c0_i32, %c0_i32_0 : i32, i32
  }
  func.func @transform_11(%arg0: i32, %arg1: i32) -> (i32, i32, i32) {
    %c0_i32 = arith.constant 0 : i32
    %c0_i32_0 = arith.constant 0 : i32
    return %arg0, %arg1, %c0_i32 : i32, i32, i32
  }
}

</mosaic_0001>

<bundles_post_ra>
// kernel: tpu_custom_call.1
= control target key start
LH: loop header
LB: loop body
LE: loop exit
PB: predicated region body
PF: predicated region fallthrough
CT: control target
= control target key end

     0   :  { %16 = vsyncpa [#allocation3], 0  ;;  %s1964_s0 = inlined_call_operand.vmem [shape: bf16[2,28,32], index: 0, kind: input, shape index: {}]   ;;  %s1965_s1 = inlined_call_operand.vmem [shape: bf16[2,24,64], index: 1, kind: input, shape index: {}]   ;;  %s1966_s2 = inlined_call_operand.vmem [shape: bf16[2,1,32], index: 2, kind: input, shape index: {}]   ;;  %s1967_s3 = inlined_call_operand.hbm [shape: bf16[32,64], index: 3, kind: input, shape index: {}]   ;;  %s1968_s4 = inlined_call_operand.hbm [shape: bf16[32,64], index: 4, kind: input, shape index: {}]   ;;  %s1969_s5 = inlined_call_operand.vmem [shape: bf16[32,64], index: 5, kind: input, shape index: {}]   ;;  %s1970_s6 = inlined_call_operand.vmem [shape: bf16[64,64], index: 6, kind: input, shape index: {}]   ;;  %s1971_s7 = inlined_call_operand.vmem [shape: f32[1,64], index: 7, kind: input, shape index: {}]   ;;  %s1972_s8 = inlined_call_operand.hbm [shape: bf16[32,128], index: 8, kind: input, shape index: {}]   ;;  %s1973_s9 = inlined_call_operand.hbm [shape: bf16[32,128], index: 9, kind: input, shape index: {}]   ;;  %s1974_s10 = inlined_call_operand.vmem [shape: f32[1,128], index: 10, kind: input, shape index: {}]   ;;  %s1975_s11 = inlined_call_operand.hbm [shape: f32[2,24,128], index: 11, kind: output, shape index: {}]  }
   0x1   :  { %17 = vsyncpa [#allocation6], 0 }
   0x2   :  { %18 = vsyncpa [#allocation9], 0 }
   0x3   :  { %19 = vsyncpa [#allocation4], 0 }
   0x4   :  { %21 = vsyncpa [#allocation4 + $0x1], 0  ;;  %s1663_s17 = smov 0   ;;  %s1665_s18 = smov 0  }
   0x5   :  { %s1667_s19 = smov 0   ;;  %s1669_s20 = smov 0  }
   0x6   :  { %s1671_s21 = smov 0   ;;  %s1673_s22 = smov 0  }
   0x7   :  { %s1675_s23 = smov 0   ;;  %s1677_s24 = smov 0  }
   0x8 LB: > { %1982 = sst [smem:[#allocation15_spill]] %s1571_s19  ;;  %s1121_s25 = sadd.s32 4294967295, %s1591_s24   ;;  %s1591_s24 = sphi %s1677_s24, %s27_s24   ;;  %s1587_s23 = sphi %s1675_s23, %s2005_s23   ;;  %s1583_s22 = sphi %s1673_s22, %s2004_s22   ;;  %s1579_s21 = sphi %s1671_s21, %s2003_s21   ;;  %s1575_s20 = sphi %s1669_s20, %s2002_s20   ;;  %s1571_s19 = sphi %s1667_s19, %s2001_s19   ;;  %s1567_s18 = sphi %s1665_s18, %s2007_s18   ;;  %s1563_s17 = sphi %s1663_s17, %s2006_s17  }
   0x9   : > { %1983 = sst [smem:[#allocation16_spill]] %s1583_s22  ;;  %s1122_s26 = sadd.s32 4294967294, %s1591_s24  }
   0xa   : > { %1984 = sst [smem:[#allocation17_spill]] %s1587_s23  ;;  %s36_s27 = sadd.s32 1, %s1583_s22 }
   0xb   : > { %s39_s28 = sadd.s32 1, %s1587_s23  ;;  %p37_p0 = scmp.ge.s32.totalorder %s36_s27, 3 }
   0xc   : > { %s296_s29 = sadd.s32 1, %s1571_s19  ;;  %p306_p1 = scmp.ne.s32.totalorder %s1571_s19, %s1567_s18 }
   0xd   : > { %p307_p2 = scmp.eq.s32.totalorder %s1121_s25, 5  ;;  %s2009_s27 = smov (%p37_p0, %s36_s27), 0 }
   0xe   : > { %1985 = sst [smem:[#allocation18_spill]] %s2009_s27  ;;  %s2011_s28 = smov (!%p37_p0, %s39_s28), %s1587_s23 }
   0xf   : > { %s292_s30 = ssub.s32 %s1583_s22, %s2009_s27  ;;  %p1715_p3 = por %p307_p2, %p306_p1 }
  0x10   : > { %p41_p4 = scmp.ge.s32.totalorder %s2011_s28, 2  ;;  %p312_p5 = scmp.ne.s32.totalorder %s1567_s18, %s1563_s17 }
  0x11   : > { %p313_p6 = scmp.eq.s32.totalorder %s1122_s26, 5  ;;  %p1123_p7 = scmp.ge.s32.totalorder %s1591_s24, 1 }
  0x12   : > { %s2013_s28 = smov (%p41_p4, %s2011_s28), 0  ;;  %p320_p9 = scmp.lt.s32.totalorder %s1591_s24, 7 }
  0x13   : > { %1987 = sst [smem:[#allocation19_spill]] %s2013_s28  ;;  %p1724_p8 = por %p313_p6, %p312_p5 }
  0x14   : > { %s291_s14 = ssub.s32 %s1587_s23, %s2013_s28  ;;  %p1731_p10 = pnand %p1123_p7, %p320_p9 }
  0x15   : > { %s1988_s13 = scalar_select %p1724_p8, 1, 0 }
  0x16   : > { %s293_s15 = sor.u32 %s292_s30, %s291_s14  ;;  %p1735_p12 = scmp.eq.s32.totalorder %s1121_s25, 0 }
  0x17   : > { %1989 = sst [smem:[#allocation20_spill]] %s1988_s13  ;;  %p294_p11 = scmp.eq.s32.totalorder %s293_s15, 0 }
  0x18   : > { %p1263_p13 = pneg %p1731_p10  ;;  %s1593_s30 = smov [#allocation5]  }
  0x19   : > { %s1742_s26 = scalar_select %p294_p11, %s1571_s19, %s296_s29  }
  0x1a   : > { %p1746_p0 = pnand %p1735_p12, %p1263_p13  ;;  %s345_s14 = sshll.u32 %s1593_s30, 4  ;;  %s346_s14 = int_to_ptr.vmem [resolvable:$true] %s345_s14 }
  0x1b   : > { %1992 = sst [smem:[#allocation21_spill]] %s1742_s26  ;;  %s1394_s25 = scalar_lea.vmem %s346_s14, 256 }
  0x1c   : > { %p1385_p1 = pneg %p1746_p0  ;;  %p1395_p2 = scmp.ne.s32.totalorder %s346_s14, %s1394_s25 }
  0x1d   : > { %p1402_p6 = scmp.lt.s32.totalorder %s346_s14, %s346_s14  ;;  %p1403_p7 = scmp.lt.s32.totalorder %s1394_s25, %s1394_s25 }
  0x1e   : > { %p1397_p4 = pnand %p1395_p2, %p1385_p1 }
  0x1f   : > { %p1404_p9 = por %p1403_p7, %p1402_p6 }
  0x20   : > { %p1398_p5 = pneg %p1397_p4 }
  0x22   : > { %p1405_p11 = pnand %p1404_p9, %p1398_p5 }
  0x24   : > { %1408 = shalt.err (!%p1405_p11)
}
  0x25   : > { %s1594_s29 = smov 64   ;;  %s1595_s15 = smov 4  }
  0x26   : > { %1269 = dma.hbm_to_vmem [thread:$0]  (!%p1746_p0), %s1968_s4, 256, %s346_s14, [#allocation6], %s1594_s29, %s1594_s29, %s1595_s15  }
  0x27   : > { %s1596_s23 = smov [#allocation2]   ;;  %s1597_s19 = smov [#allocation7]  }
  0x28   : > { %s332_s26 = sshll.u32 %s1596_s23, 4  ;;  %s367_s13 = sshll.u32 %s1597_s19, 4  ;;  %s333_s26 = int_to_ptr.vmem [resolvable:$true] %s332_s26  ;;  %s368_s13 = int_to_ptr.vmem [resolvable:$true] %s367_s13 }
  0x29   : > { %s1420_s25 = scalar_lea.vmem %s333_s26, 256  ;;  %p1428_p5 = scmp.lt.s32.totalorder %s333_s26, %s333_s26 }
  0x2a   : > { %p1421_p13 = scmp.ne.s32.totalorder %s333_s26, %s1420_s25  ;;  %p1429_p6 = scmp.lt.s32.totalorder %s1420_s25, %s1420_s25 }
  0x2c   : > { %p1423_p2 = pnand %p1421_p13, %p1385_p1  ;;  %p1430_p7 = por %p1429_p6, %p1428_p5 }
  0x2e   : > { %p1424_p4 = pneg %p1423_p2 }
  0x30   : > { %p1431_p9 = pnand %p1430_p7, %p1424_p4 }
  0x32   : > { %1434 = shalt.err (!%p1431_p9)
}
  0x33   : > { %1266 = dma.hbm_to_vmem [thread:$0]  (!%p1746_p0), %s1967_s3, 256, %s333_s26, [#allocation3], %s1594_s29, %s1594_s29, %s1595_s15  }
  0x34   : > { %s1446_s28 = scalar_lea.vmem %s368_s13, 256  ;;  %p1454_p8 = scmp.lt.s32.totalorder %s368_s13, %s368_s13 }
  0x35   : > { %p1447_p11 = scmp.ne.s32.totalorder %s368_s13, %s1446_s28  ;;  %p1455_p5 = scmp.lt.s32.totalorder %s1446_s28, %s1446_s28 }
  0x37   : > { %p1449_p13 = pnand %p1447_p11, %p1385_p1  ;;  %p1456_p4 = por %p1455_p5, %p1454_p8 }
  0x39   : > { %p1450_p2 = pneg %p1449_p13 }
  0x3b   : > { %p1457_p6 = pnand %p1456_p4, %p1450_p2 }
  0x3d   : > { %1460 = shalt.err (!%p1457_p6)
}
  0x3e   : > { %1272 = dma.hbm_to_vmem [thread:$0]  (!%p1746_p0), %s1972_s8, 256, %s368_s13, [#allocation6], %s1594_s29, %s1594_s29, %s1595_s15  }
  0x3f   : > { %s1598_s26 = smov [#allocation8]  }
  0x40   : > { %s380_s25 = sshll.u32 %s1598_s26, 4  ;;  %s381_s25 = int_to_ptr.vmem [resolvable:$true] %s380_s25 }
  0x41   : > { %s1472_s23 = scalar_lea.vmem %s381_s25, 256  ;;  %p1480_p11 = scmp.lt.s32.totalorder %s381_s25, %s381_s25 }
  0x42   : > { %p1473_p7 = scmp.ne.s32.totalorder %s381_s25, %s1472_s23  ;;  %p1481_p13 = scmp.lt.s32.totalorder %s1472_s23, %s1472_s23 }
  0x44   : > { %p1475_p8 = pnand %p1473_p7, %p1385_p1  ;;  %p1482_p2 = por %p1481_p13, %p1480_p11 }
  0x46   : > { %p1476_p9 = pneg %p1475_p8 }
  0x48   : > { %p1483_p5 = pnand %p1482_p2, %p1476_p9 }
  0x4a   : > { %1486 = shalt.err (!%p1483_p5)
}
  0x4b   : > { %1275 = dma.hbm_to_vmem [thread:$0]  (!%p1746_p0), %s1973_s9, 256, %s381_s25, [#allocation9], %s1594_s29, %s1594_s29, %s1595_s15  }
  0x4c   : > { %424 = sbr.rel (%p1731_p10) target bundleno = 658 (0x292), region = 64 }
  0x51   : > { %1546 = dma.done.wait (%p1735_p12), [#allocation3], 256  }
  0x52   : > { %1548 = vsyncadd (%p1735_p12), [#allocation3], 4294967040 }
  0x53   : > { %1550 = dma.done.wait (%p1735_p12), [#allocation6], 512  }
  0x54   : > { %1552 = vsyncadd (%p1735_p12), [#allocation6], 4294966784 }
  0x55   : > { %1554 = dma.done.wait (%p1735_p12), [#allocation9], 256  }
  0x56   : > { %1556 = vsyncadd (%p1735_p12), [#allocation9], 4294967040  ;;  %p487_p10 = scmp.lt.s32.totalorder %s1579_s21, 1  ;;  %s1138_s22 = sshll.u32 %s1575_s20, 3  ;;  %v511_v0 = vlaneseq  ;;  %v1599_v1 = vmov 0.0   ;;  %vm1600_vm0 = vmmov 0  }
  0x57   : > { %1199 = vmatprep.subr.bf16.mxu1 %v1599_v1  ;;  %1191 = vmatprep.subr.bf16.mxu0 %v1599_v1  ;;  %s505_s16 = sshra.s32 %s1138_s22, 3  ;;  %v514_v3 = vstv %s1138_s22  ;;  %v1362_v6 = vld [vmem:[#allocation2 + $0x8] sm:$0xff]   ;;  %v1363_v8 = vld [vmem:[#allocation5 + $0x8] sm:$0xff]   ;;  %v1364_v9 = vld [vmem:[#allocation2] sm:$0xff]   ;;  %p494_p12 = scmp.lt.s32.totalorder %s1575_s20, 2  ;;  %vm572_vm9 = vcmask 261120  }
  0x58   : > { %1203 = vmatprep.mubr.msk.bf16.mxu1 %vm1600_vm0, %v1599_v1  ;;  %s1817_s29 = scalar_select %p487_p10, %s1579_s21, 1  ;;  %v512_v2 = vshrl.u32 %v511_v0, 7  ;;  %1195 = vmatprep.mubr.msk.bf16.mxu0 %vm1600_vm0, %v1599_v1  ;;  %v1366_v16 = vld [vmem:[#allocation5] sm:$0xff]   ;;  %v1367_v23 = vld [vmem:[%s1970_s6 + $0x18] sm:$0xff]   ;;  %v1368_v26 = vld [vmem:[%s1969_s5 + $0x8] sm:$0xff]   ;;  %vm764_vm10 = vcmask 523264  }
  0x59   : > { %s1139_s15 = sshll.u32 %s505_s16, 2  ;;  %1200 = vmatpush3.bf16.msra.mxu1 %v1362_v6  ;;  %1192 = vmatpush3.bf16.msra.mxu0 %v1363_v8  ;;  %v1369_v28 = vld [vmem:[%s1970_s6 + $0x10] sm:$0xff]   ;;  %v1370_v30 = vld [vmem:[%s1969_s5] sm:$0xff]   ;;  %v1371_v31 = vld [vmem:[%s1970_s6 + $0x8] sm:$0xff]   ;;  %s1244_s25 = smul.u32 3, %s1579_s21 }
  0x5a   : > { %s1170_s27 = sshll.u32 %s1817_s29, 4  ;;  %v513_v4 = vadd.s32 8, %v512_v2  ;;  %v515_v5 = vadd.s32 %v514_v3, %v512_v2  ;;  %s502_s13 = scalar_lea.vmem %s1966_s2, %s1817_s29  ;;  %v529_v10 = vsub.s32 0, %v512_v2  ;;  %1201 = vmatprep.subr.bf16.mxu1 %v1599_v1  ;;  %1193 = vmatprep.subr.bf16.mxu0 %v1599_v1  ;;  %v1372_v33 = vld [vmem:[%s1970_s6] sm:$0xff]   ;;  %v1373_v35 = vld [vmem:[#allocation8 + $0x8] sm:$0xff]   ;;  %v1374_v36 = vld [vmem:[#allocation8] sm:$0xff]  }
  0x5b   : > { %s491_s30 = scalar_lea.vmem %s1964_s0, %s1170_s27  ;;  %v523_v13 = vld [vmem:[%s502_s13] sm:$0x1]  ;;  %s1243_s16 = smul.u32 3, %s1817_s29  ;;  %v1375_v38 = vld [vmem:[#allocation7 + $0x8] sm:$0xff]  }
  0x5c   : > { %s508_s26 = scalar_lea.vmem %s491_s30, %s1139_s15  ;;  %v516_v7 = vadd.s32 %v514_v3, %v513_v4  ;;  %vm517_vm1 = vcmp.ge.s32.totalorder %v515_v5, 2  ;;  %vm519_vm2 = vcmp.lt.s32.totalorder %v515_v5, 26  ;;  %v525_v15 = vpack.i.b16 %v523_v13, %v523_v13  ;;  %v1156_v53 = vld [vmem:[%s1971_s7] ss:$0 sm:$0xff]  ;;  %s975_s13 = sadd.s32 %s1575_s20, %s1244_s25 }
  0x5d   : > { %v1830_v11 = vld [vmem:[%s508_s26] sm:$0xf]  ;;  %v1832_v12 = vld [vmem:[%s508_s26 + $0x4] sm:$0x3]  ;;  %1202 = vmatpush3.bf16.msra.mxu1 %v1364_v9  ;;  %vm1837_vm5 = vmand %vm517_vm1, %vm519_vm2  ;;  %1194 = vmatpush3.bf16.msra.mxu0 %v1366_v16  ;;  %s495_s27 = scalar_select %p494_p12, %s1575_s20, 2 }
  0x5e   : > { %vm518_vm3 = vcmp.ge.s32.totalorder %v516_v7, 2  ;;  %vm520_vm4 = vcmp.lt.s32.totalorder %v516_v7, 26  ;;  %v1158_v14 = vcombine.low %v1830_v11, %v1832_v12  ;;  %v530_v19 = vrot.slane %v525_v15, %v529_v10  ;;  %1215 = vmatprep.subr.bf16.mxu1 %v1599_v1  ;;  %1207 = vmatprep.subr.bf16.mxu0 %v1599_v1  ;;  %vm541_vm7 = vmpackc.low %vm1837_vm5, %vm1837_vm5  ;;  %v1376_v59 = vld [vmem:[#allocation7] sm:$0xff]   ;;  %s484_s26 = sand.u32 1, %s1567_s18  }
  0x5f   : > { %vm1841_vm6 = vmand %vm518_vm3, %vm520_vm4  ;;  %s497_s29 = sadd.s32 %s1243_s16, %s495_s27  ;;  %s1134_s23 = sshll.u32 %s484_s26, 3  ;;  %v1165_v10 = vld [vmem:[%s1974_s10] ss:$0 sm:$0xff] }
  0x60   : > { %v1140_v20 = vcombine.low %v530_v19, %v530_v19  ;;  %vm542_vm8 = vmpackc.low %vm1841_vm6, %vm1841_vm6  ;;  %s1137_s19 = sshll.u32 %s497_s29, 2  ;;  %v843_v37 = vrot.slane %v1158_v14, 1  ;;  %s1601_s29 = smov 96  }
  0x61   : > { %s499_s28 = scalar_lea.vmem %s1965_s1, %s1137_s19  ;;  %s1167_s16 = sshll.u32 %s975_s13, 7 }
  0x62   : > { %v535_v21 = vadd.bf16 %v1140_v20, %v1830_v11  ;;  %v536_v22 = vadd.bf16 %v1140_v20, %v1832_v12  ;;  %v545_v34 = vld [vmem:[%s499_s28] sm:$0xf]  ;;  %s486_s27 = scalar_lea.vmem [#allocation10], %s1134_s23  ;;  %s1912_s30 = scalar_lea.hbm %s1975_s11, %s1167_s16 }
  0x63   : > { %s979_s15 = sshll.u32 %s486_s27, 4  ;;  %s964_s20 = scalar_lea.sflag [#allocation4], %s484_s26  ;;  %s1914_s15 = int_to_ptr.vmem [resolvable:$true] %s979_s15 }
  0x64   : > { %v543_v24 = vsel %vm541_vm7, %v535_v21, 0  ;;  %v544_v25 = vsel %vm542_vm8, %v536_v22, 0  ;;  %s1487_s21 = scalar_lea.vmem %s1914_s15, 128 }
  0x65   : > { %v1141_v27 = vcombine.low %v543_v24, %v544_v25  ;;  %1204 = vmatmul.mubr.msk.bf16.vlgmr.msra.gmra.mxu1 %vm572_vm9, %v543_v24  ;;  %p1488_p0 = scmp.ne.s32.totalorder %s1914_s15, %s1487_s21 }
  0x66   : > { %1216 = vmatpush3.bf16.msra.mxu1 %v1367_v23  ;;  %1223 = vmatprep.mubr.msk.bf16.mxu1 %vm1600_vm0, %v1599_v1 }
  0x67   : > { %v559_v29 = vrot.slane %v1141_v27, 1  ;;  %1217 = vmatprep.subr.bf16.mxu1 %v1599_v1  ;;  %v675_v32 = vrot.slane %v1141_v27, 2  ;;  %p1489_p1 = pnand %p1488_p0, %p1715_p3 }
  0x69   : > { %1196 = vmatmul.mubr.msk.bf16.vlgmr.msra.gmra.mxu0 %vm572_vm9, %v559_v29  ;;  %p1490_p4 = pneg %p1489_p1 }
  0x6a   : > { %1208 = vmatpush3.bf16.msra.mxu0 %v1368_v26  ;;  %1218 = vmatpush3.bf16.msra.mxu1 %v1369_v28 }
  0x6b   : > { %1209 = vmatprep.subr.bf16.mxu0 %v1599_v1  ;;  %1219 = vmatprep.subr.bf16.mxu1 %v1599_v1 }
  0x6c   : > { %1211 = vmatprep.mubr.msk.bf16.mxu0 %vm1600_vm0, %v1599_v1 }
  0x6e   : > { %1210 = vmatpush3.bf16.msra.mxu0 %v1370_v30  ;;  %1220 = vmatpush3.bf16.msra.mxu1 %v1371_v31 }
  0x6f   : > { %1221 = vmatprep.subr.bf16.mxu1 %v1599_v1  ;;  %1227 = vmatprep.subr.bf16.mxu0 %v1599_v1 }
  0x71   : > { %1212 = vmatmul.mubr.msk.bf16.vlgmr.msra.gmra.mxu0 %vm572_vm9, %v675_v32 }
  0x72   : > { %1222 = vmatpush3.bf16.msra.mxu1 %v1372_v33  ;;  %1231 = vmatprep.mubr.msk.bf16.mxu0 %vm1600_vm0, %v1599_v1 }
  0x73   : > { %1228 = vmatpush3.bf16.msra.mxu0 %v1373_v35 }
  0x74   : > { %1229 = vmatprep.subr.bf16.mxu0 %v1599_v1 }
  0x75   : > { %1224 = vmatmul.mubr.msk.bf16.vlgmr.msra.gmra.mxu1 %vm764_vm10, %v545_v34 }
  0x77   : > { %1230 = vmatpush3.bf16.msra.mxu0 %v1374_v36 }
  0x78   : > { %1235 = vmatprep.subr.bf16.mxu0 %v1599_v1 }
  0x7a   : > { %1232 = vmatmul.mubr.msk.bf16.vlgmr.msra.gmra.mxu0 %vm572_vm9, %v843_v37 }
  0x7b   : > { %1236 = vmatpush3.bf16.msra.mxu0 %v1375_v38  ;;  %1239 = vmatprep.mubr.msk.bf16.mxu0 %vm1600_vm0, %v1599_v1 }
  0x7c   : > { %1237 = vmatprep.subr.bf16.mxu0 %v1599_v1 }
  0x7f   : > { %1238 = vmatpush3.bf16.msra.mxu0 %v1376_v59 }
 0x125   : > { %v665_v39 = vpop.f32.mrf.mxu1 }
 0x127   : > { %v1205_v40 = vpop.f32.mrf.mxu1 }
 0x129   : > { %v610_v41 = vpop.f32.mrf.mxu0  ;;  %v668_v42 = vpop.f32.mrf.mxu1 }
 0x12a   : > { %v666_v47 = vadd.f32 %v665_v39, %v610_v41 }
 0x12b   : > { %v1197_v43 = vpop.f32.mrf.mxu0  ;;  %v1206_v44 = vpop.f32.mrf.mxu1 }
 0x12d   : > { %v613_v45 = vpop.f32.mrf.mxu0 }
 0x12f   : > { %v1198_v46 = vpop.f32.mrf.mxu0 }
 0x131   : > { %v725_v48 = vpop.f32.mrf.mxu0 }
 0x132   : > { %v731_v49 = vadd.f32 %v725_v48, %v666_v47 }
 0x133   : > { %v1213_v50 = vpop.f32.mrf.mxu0 }
 0x135   : > { %v728_v51 = vpop.f32.mrf.mxu0  ;;  %v802_v52 = vpop.f32.mrf.mxu1 }
 0x136   : > { %v808_v54 = vadd.f32 %v802_v52, %v731_v49 }
 0x137   : > { %v1214_v55 = vpop.f32.mrf.mxu0  ;;  %v1225_v56 = vpop.f32.mrf.mxu1 }
 0x138   : > { %v816_v57 = vadd.f32 %v1156_v53, %v808_v54 }
 0x139   : > { %v805_v58 = vpop.f32.mrf.mxu1 }
 0x13a   : > { %1377 = vtanh.f32 %v816_v57  ;;  %v1157_v62 = vmul.f32 -1.442695, %v816_v57  ;;  %v893_v63 = vpop.f32.mrf.mxu0 }
 0x13b   : > { %v1226_v60 = vpop.f32.mrf.mxu1 }
 0x13c   : > { %v1233_v0 = vpop.f32.mrf.mxu0  ;;  %1379 = vpow2.f32 %v1157_v62 }
 0x13e   : > { %v896_v1 = vpop.f32.mrf.mxu0 }
 0x140   : > { %v1234_v2 = vpop.f32.mrf.mxu0 }
 0x147   : > { %v1378_v61 = vpop.eup %1377 }
 0x148   : > { %825 = vrot.lane.b32.xlu0 %v1378_v61, %s1601_s29  ;;  %s1602_s29 = smov [#allocation10]  }
 0x149   : > { %v1380_v3 = vpop.eup %1379  ;;  %s1491_s25 = sshll.u32 %s1602_s29, 4  ;;  %s1492_s25 = int_to_ptr.vmem [resolvable:$false] %s1491_s25 }
 0x14a   : > { %v820_v4 = vadd.f32 1.0, %v1380_v3  ;;  %s1493_s23 = scalar_lea.vmem %s1492_s25, 256  ;;  %p1494_p6 = scmp.lt.s32.totalorder %s1914_s15, %s1492_s25 }
 0x14b   : > { %p1495_p7 = scmp.lt.s32.totalorder %s1493_s23, %s1487_s21 }
 0x14c   : > { %1381 = vrcp.f32 %v820_v4 }
 0x14d   : > { %p1496_p8 = por %p1495_p7, %p1494_p6 }
 0x14f   : > { %p1497_p9 = pnand %p1496_p8, %p1490_p4 }
 0x159   : > { %v1382_v5 = vpop.eup %1381 }
 0x1ba   : > { %v826_v6 = vpop.permute.xlu0 %825 }
 0x1bb   : > { %v828_v7 = vmul.f32 %v1382_v5, %v826_v6 }
 0x1bd   : > { %v829_v8 = vpack.c.bf16 %v828_v7, %v828_v7 }
 0x1bf   : > { %1240 = vmatmul.mubr.msk.bf16.vlgmr.msra.gmra.mxu0 %vm572_vm9, %v829_v8 }
 0x27f   : > { %v948_v9 = vpop.f32.mrf.mxu0 }
 0x280   : > { %v949_v11 = vadd.f32 %v948_v9, %v893_v63 }
 0x281   : > { %v1241_v12 = vpop.f32.mrf.mxu0 }
 0x282   : > { %v961_v13 = vadd.f32 %v1165_v10, %v949_v11 }
 0x283   : > { %v951_v14 = vpop.f32.mrf.mxu0 }
 0x284   : > { %962 = vst [vmem:[%s486_s27] sm:$0xff] %v961_v13 }
 0x285   : > { %v1242_v15 = vpop.f32.mrf.mxu0 }
 0x286   : > { %1500 = shalt.err (!%p1497_p9)
}
 0x287   : > { %s1501_s13 = scalar_lea.hbm %s1912_s30, 128  ;;  %s1505_s22 = scalar_lea.hbm %s1975_s11, 768 }
 0x288   : > { %p1502_p11 = scmp.ne.s32.totalorder %s1912_s30, %s1501_s13  ;;  %p1506_p5 = scmp.lt.s32.totalorder %s1912_s30, %s1975_s11 }
 0x289   : > { %p1507_p10 = scmp.lt.s32.totalorder %s1505_s22, %s1501_s13 }
 0x28a   : > { %p1503_p13 = pnand %p1502_p11, %p1715_p3 }
 0x28b   : > { %p1508_p12 = por %p1507_p10, %p1506_p5 }
 0x28c   : > { %p1504_p2 = pneg %p1503_p13 }
 0x28e   : > { %p1509_p0 = pnand %p1508_p12, %p1504_p2 }
 0x290   : > { %1512 = shalt.err (!%p1509_p0)
}
 0x291   : > { %1261 = dma.vmem_to_hbm [thread:$0]  (%p1715_p3), %s1914_s15, 128, %s1912_s30, %s964_s20  }
 0x292 PF: > { %s1998_s28 = sld [smem:[#allocation20_spill]]  ;;  %p1288_p1 = scmp.ge.s32.totalorder %s1591_s24, 2 }
 0x293   : > { %s991_s14 = sand.u32 1, %s1563_s17  }
 0x294   : > { %s992_s21 = scalar_lea.sflag [#allocation4], %s991_s14 }
 0x298   : > { %p1999_p4 = scmp.ne.s32.totalorder %s1998_s28, 0 }
 0x29a   : > { %p1277_p6 = pnand %p1288_p1, %p1999_p4 }
 0x29c   : > { %p1278_p7 = pneg %p1277_p6 }
 0x29e   : > { %1558 = dma.done.wait (%p1278_p7), %s992_s21, 128  }
 0x29f   : > { %1560 = vsyncadd (%p1278_p7), %s992_s21, 4294967168  ;;  %s27_s24 = sadd.s32 1, %s1591_s24   ;;  %s2000_s12 = sld [smem:[#allocation15_spill]] }
 0x2a0   : > { %p24_p8 = scmp.ge.s32.totalorder %s27_s24, 8   ;;  %s2001_s19 = sld [smem:[#allocation21_spill]] }
 0x2a1   : > { %s2002_s20 = sld [smem:[#allocation16_spill]]  ;;  %s2006_s17 = smov %s1567_s18 }
 0x2a2   : > { %s2003_s21 = sld [smem:[#allocation17_spill]]  ;;  %26 = sbr.rel (!%p24_p8) target bundleno = 8 (0x8), region = 123 }
 0x2a3   : > { %s2004_s22 = sld [smem:[#allocation18_spill]] }
 0x2a4   : > { %s2005_s23 = sld [smem:[#allocation19_spill]] }
 0x2a5   : > { %s2007_s18 = smov %s2000_s12 }
 0x2a7   :  { %997 = vsyncpa [#allocation3], 1 }
 0x2a8   :  { %999 = vsyncpa [#allocation3 + $0x1], 1 }
 0x2a9   :  { %1000 = vsyncpa [#allocation6], 1 }
 0x2aa   :  { %1001 = vsyncpa [#allocation9], 1 }
 0x2ab   :  { %1002 = vsyncpa [#allocation4], 1 }
 0x2ac   :  { %1004 = vsyncpa [#allocation4 + $0x1], 1 }

</bundles_post_ra>
